<compile_context>
chip_gen: v7x
topology: tpu7x:2x2x1
jax: 0.10.0
libtpu: 0.0.40
codegen_flags: <defaults>
</compile_context>

<pallas_src>
import jax
import jax.numpy as jnp
from jax.experimental import pallas as pl
from jax.experimental.pallas import tpu as pltpu


def _param_hbm_copy_kernel(p_hbm, o_hbm, sem):
    # Single HBM->HBM DMA: pure DMA-engine work at HBM bandwidth, no VMEM round-trip.
    cp = pltpu.make_async_copy(p_hbm, o_hbm, sem)
    cp.start()
    cp.wait()


def _materialize_parameter(parameter):
    """Materializing copy of `parameter` via one HBM->HBM DMA (no grid, no VMEM)."""
    return pl.pallas_call(
        _param_hbm_copy_kernel,
        out_shape=jax.ShapeDtypeStruct(parameter.shape, parameter.dtype),
        in_specs=[pl.BlockSpec(memory_space=pl.ANY)],
        out_specs=pl.BlockSpec(memory_space=pl.ANY),
        scratch_shapes=[pltpu.SemaphoreType.DMA(())],
    )(parameter)


def parameter_layer_forward(x, parameter, *, materialize=False):
    """Pallas equivalent of ParameterLayer.forward: drop x, return the parameter.

    Default (materialize=False) matches the PyTorch module exactly: the stored
    parameter is returned as-is — no kernel, no HBM traffic, no launch overhead.
    Set materialize=True only if a distinct output buffer is required; that path
    runs the single-DMA Pallas kernel above.
    """
    del x  # semantics of the PyTorch module: the input is ignored
    if not materialize:
        return parameter
    return _materialize_parameter(parameter)


if __name__ == "__main__":
    key = jax.random.PRNGKey(0)
    k_param, k_x = jax.random.split(key)

    # Deterministic parameter (what nn.Parameter(tensor) would hold): [H=32, D=128]
    parameter = jax.random.normal(k_param, (32, 128), dtype=jnp.float32)

    # Example input that the forward pass discards: NCHW activation [B=2, C=4, 16, 16]
    x = jax.random.normal(k_x, (2, 4, 16, 16), dtype=jnp.float32)

    # Fast path — exact module semantics: returns the parameter, zero data movement.
    out_fast = parameter_layer_forward(x, parameter)
    out_fast = jax.block_until_ready(out_fast)

    # Materializing path — exercises the Pallas HBM->HBM DMA copy kernel once.
    out_copy = parameter_layer_forward(x, parameter, materialize=True)
    out_copy = jax.block_until_ready(out_copy)

    assert out_fast.shape == parameter.shape and out_fast.dtype == parameter.dtype
    assert out_copy.shape == parameter.shape and out_copy.dtype == parameter.dtype
    assert bool(jnp.array_equal(out_fast, parameter))
    assert bool(jnp.array_equal(out_copy, parameter))

    print("KERNEL_OK")
</pallas_src>

<mosaic_0001>
module attributes {stable_mosaic.version = 11 : i64} {
  func.func @_param_hbm_copy_kernel(%arg0: memref<32x128xf32, #tpu.memory_space<any>>, %arg1: memref<32x128xf32, #tpu.memory_space<any>>, %arg2: memref<!tpu.dma_semaphore, #tpu.memory_space<semaphore_mem>>) attributes {dimension_semantics = [], scalar_prefetch = 0 : i64, scratch_operands = 1 : i64, tpu.core_type = #tpu.core_type<tc>} {
    tpu.enqueue_dma source(%arg0 : memref<32x128xf32, #tpu.memory_space<any>>) target(%arg1 : memref<32x128xf32, #tpu.memory_space<any>>) target_semaphore(%arg2 : memref<!tpu.dma_semaphore, #tpu.memory_space<semaphore_mem>>)
    tpu.wait_dma2 semaphore(%arg2 : memref<!tpu.dma_semaphore, #tpu.memory_space<semaphore_mem>>) src(%arg0 : memref<32x128xf32, #tpu.memory_space<any>>) dst(%arg1 : memref<32x128xf32, #tpu.memory_space<any>>)
    return
  }
}

</mosaic_0001>

<bundles_post_ra>
// kernel: tpu_custom_call.1
= control target key start
LH: loop header
LB: loop body
LE: loop exit
PB: predicated region body
PF: predicated region fallthrough
CT: control target
= control target key end

     0   :  { %s34_s6 = smov [#allocation2]   ;;  %s35_s7 = smov [#allocation3]   ;;  %s53_s0 = inlined_call_operand.hbm [shape: f32[32,128], index: 0, kind: input, shape index: {}]   ;;  %s54_s1 = inlined_call_operand.hbm [shape: f32[32,128], index: 1, kind: output, shape index: {}]  }
   0x1   :  { %s36_s8 = smov 0  }
   0x2   :  { %18 = dma.general %s53_s0, 512, %s54_s1, %s34_s6, %s35_s7, [#allocation4], %s36_s8, 0  }
   0x3   :  { %32 = dma.done.wait [#allocation2], 512 }
   0x4   :  { %33 = vsyncadd [#allocation2], 4294966784 }
   0x5   :  { %22 = vsyncmov [#allocation2] }
   0x8   :  { %s23_s13 = vpop.sfrf %22 }
   0x9   :  { %p28_p0 = scmp.ne.s32.totalorder %s23_s13, 0 }
   0xb   :  { %27 = shalt.err (%p28_p0)  }

</bundles_post_ra>
